<compile_context>
chip_gen: v6e
topology: v6e:2x2x1
jax: 0.10.0
libtpu: 0.0.40
codegen_flags: <defaults>
</compile_context>

<pallas_src>
import jax
import jax.numpy as jnp
from jax.experimental import pallas as pl
from jax.experimental.pallas import tpu as pltpu

SCALE = 0.45
_LANES = 128
_SUBLANES = 8
_TILE_ELEMS = _SUBLANES * _LANES           # 1024 elems = one f32 (8,128) vreg
_BLOCK_ROWS = 2048                         # (2048,128) f32 = 1 MiB per block
_GRIDLESS_MAX_BYTES = 8 * 1024 * 1024      # in+out byte budget for no-grid path


def _scale_kernel(x_ref, o_ref):
    # single elementwise VPU pass over the lane-dense tile
    o_ref[...] = x_ref[...] * SCALE


def _cost(n_elems, itemsize):
    return pl.CostEstimate(
        flops=n_elems, transcendentals=0, bytes_accessed=2 * n_elems * itemsize
    )


def _scale_slab_gridless(x2d):
    """Whole-array, no-grid path for small slabs (exact (8,128) tiling)."""
    return pl.pallas_call(
        _scale_kernel,
        out_shape=jax.ShapeDtypeStruct(x2d.shape, x2d.dtype),
        in_specs=[pl.BlockSpec(memory_space=pltpu.MemorySpace.VMEM)],
        out_specs=pl.BlockSpec(memory_space=pltpu.MemorySpace.VMEM),
        input_output_aliases={0: 0},
        cost_estimate=_cost(x2d.size, x2d.dtype.itemsize),
    )(x2d)


def _scale_slab_tiled(x2d, block_rows):
    """1-D grid over rows for large slabs (VMEM-safe on v7x, DMA/compute overlap)."""
    rows = x2d.shape[0]
    assert rows % block_rows == 0
    return pl.pallas_call(
        _scale_kernel,
        out_shape=jax.ShapeDtypeStruct(x2d.shape, x2d.dtype),
        grid=(rows // block_rows,),
        in_specs=[pl.BlockSpec((block_rows, _LANES), lambda i: (i, 0))],
        out_specs=pl.BlockSpec((block_rows, _LANES), lambda i: (i, 0)),
        input_output_aliases={0: 0},
        compiler_params=pltpu.CompilerParams(
            dimension_semantics=("parallel",),       # v7x: 2 TCs split HBM traffic
            vmem_limit_bytes=16 * 1024 * 1024,
        ),
        cost_estimate=_cost(x2d.size, x2d.dtype.itemsize),
    )(x2d)


def _scale_flat(x_flat, *, force_tiled=False, block_rows=_BLOCK_ROWS):
    """Scale a 1-D array by SCALE via a lane-dense (rows, 128) Pallas slab."""
    n = x_flat.shape[0]
    itemsize = x_flat.dtype.itemsize
    tiled = force_tiled or (2 * n * itemsize > _GRIDLESS_MAX_BYTES)

    # pad so the slab is an exact multiple of the (8,128) vreg tile
    # (and of the block for the gridded path) -> unmasked full-width stores.
    pad_to = block_rows * _LANES if tiled else _TILE_ELEMS
    n_pad = (-n) % pad_to
    padded = jnp.pad(x_flat, (0, n_pad)) if n_pad else x_flat
    rows = padded.shape[0] // _LANES
    x2d = padded.reshape(rows, _LANES)    # bitcast for contiguous row-major input

    y2d = _scale_slab_tiled(x2d, block_rows) if tiled else _scale_slab_gridless(x2d)
    y = y2d.reshape(-1)
    return y[:n] if n_pad else y


def unsqueeze_mul(x, *, use_pallas=True, _force_tiled=False, _block_rows=_BLOCK_ROWS):
    """x: (C, H, W) -> (C, 1, H, W), values scaled by 0.45 (module M.forward)."""
    if not use_pallas:
        # fusion path: let XLA fold the multiply into adjacent ops
        return jnp.expand_dims(x, 1) * SCALE
    scaled = _scale_flat(
        x.reshape(-1), force_tiled=_force_tiled, block_rows=_block_rows
    ).reshape(x.shape)
    # torch.unsqueeze(x, 1): metadata-only
    return jnp.expand_dims(scaled, 1)


if __name__ == "__main__":
    key = jax.random.PRNGKey(0)
    # Shape implied by the module: torch.randn([1, 224, 224])
    x9 = jax.random.normal(key, (1, 224, 224), dtype=jnp.float32)
    ref = jnp.expand_dims(x9, 1) * SCALE

    # 1) default lane-dense, grid-less path (exact (392,128) slab)
    out = jax.block_until_ready(jax.jit(unsqueeze_mul)(x9))
    assert out.shape == (1, 1, 224, 224), out.shape
    assert out.dtype == jnp.float32, out.dtype
    assert jnp.allclose(out, ref, atol=1e-6, rtol=1e-6)

    # 2) padded fallback path (element count not a multiple of 1024)
    x_odd = jax.random.normal(jax.random.PRNGKey(1), (2, 5, 7), dtype=jnp.float32)
    out_odd = jax.block_until_ready(jax.jit(unsqueeze_mul)(x_odd))
    ref_odd = jnp.expand_dims(x_odd, 1) * SCALE
    assert out_odd.shape == (2, 1, 5, 7), out_odd.shape
    assert jnp.allclose(out_odd, ref_odd, atol=1e-6, rtol=1e-6)

    # 3) gridded (large-slab / v7x VMEM-safe) path, forced with a small block
    out_tiled = jax.block_until_ready(
        jax.jit(lambda a: unsqueeze_mul(a, _force_tiled=True, _block_rows=8))(x9)
    )
    assert jnp.allclose(out_tiled, ref, atol=1e-6, rtol=1e-6)

    print("KERNEL_OK")
</pallas_src>

<mosaic_0001>
module attributes {stable_mosaic.version = 11 : i64} {
  func.func @_scale_kernel(%arg0: memref<392x128xf32, #tpu.memory_space<vmem>>, %arg1: memref<392x128xf32, #tpu.memory_space<vmem>>) attributes {dimension_semantics = [], scalar_prefetch = 0 : i64, scratch_operands = 0 : i64, tpu.core_type = #tpu.core_type<tc>} {
    %c0 = arith.constant 0 : index
    %c0_0 = arith.constant 0 : index
    %0 = vector.load %arg0[%c0, %c0_0] : memref<392x128xf32, #tpu.memory_space<vmem>>, vector<392x128xf32>
    %cst = arith.constant 4.500000e-01 : f32
    %1 = vector.broadcast %cst : f32 to vector<392x128xf32>
    %2 = arith.mulf %0, %1 : vector<392x128xf32>
    %c0_1 = arith.constant 0 : index
    %c0_2 = arith.constant 0 : index
    %3 = vector.load %arg1[%c0_1, %c0_2] : memref<392x128xf32, #tpu.memory_space<vmem>>, vector<392x128xf32>
    tpu.vector_store %arg1[%c0_1, %c0_2], %2 {strides = array<i32>} : memref<392x128xf32, #tpu.memory_space<vmem>>, vector<392x128xf32>,
    return
  }
}

</mosaic_0001>

<bundles_post_ra>
// kernel: unsqueeze_mul.1
= control target key start
LH: loop header
LB: loop body
LE: loop exit
PB: predicated region body
PF: predicated region fallthrough
CT: control target
= control target key end

     0   :  { %s463_s0 = inlined_call_operand.vmem [shape: f32[392,128], index: 0, kind: input, shape index: {}, may-alias: {0,1}]   ;;  %s464_s1 = inlined_call_operand.vmem [shape: f32[392,128], index: 1, kind: output, shape index: {}, may-alias: {0,1}]  }
   0x1   :  { %v8_v0 = vld [vmem:[%s463_s0] sm:$0xff]  ;;  %v9_v1 = vld [vmem:[%s463_s0 + $0x8] sm:$0xff]  ;;  %v10_v2 = vld [vmem:[%s463_s0 + $0x10] sm:$0xff] }
   0x2   :  { %v57_v3 = vmul.f32 0.45, %v8_v0  ;;  %v58_v4 = vmul.f32 0.45, %v9_v1  ;;  %v59_v5 = vmul.f32 0.45, %v10_v2 }
   0x3   :  { %v11_v6 = vld [vmem:[%s463_s0 + $0x18] sm:$0xff]  ;;  %v12_v7 = vld [vmem:[%s463_s0 + $0x20] sm:$0xff]  ;;  %v13_v8 = vld [vmem:[%s463_s0 + $0x28] sm:$0xff] }
   0x4   :  { %106 = vst [vmem:[%s464_s1] sm:$0xff] %v57_v3  ;;  %107 = vst [vmem:[%s464_s1 + $0x8] sm:$0xff] %v58_v4  ;;  %v60_v9 = vmul.f32 0.45, %v11_v6  ;;  %v61_v10 = vmul.f32 0.45, %v12_v7 }
   0x5   :  { %108 = vst [vmem:[%s464_s1 + $0x10] sm:$0xff] %v59_v5  ;;  %v62_v11 = vmul.f32 0.45, %v13_v8 }
   0xc   :  { %v14_v12 = vld [vmem:[%s463_s0 + $0x30] sm:$0xff]  ;;  %v15_v13 = vld [vmem:[%s463_s0 + $0x38] sm:$0xff]  ;;  %v16_v14 = vld [vmem:[%s463_s0 + $0x40] sm:$0xff] }
   0xd   :  { %109 = vst [vmem:[%s464_s1 + $0x18] sm:$0xff] %v60_v9  ;;  %110 = vst [vmem:[%s464_s1 + $0x20] sm:$0xff] %v61_v10  ;;  %v63_v15 = vmul.f32 0.45, %v14_v12  ;;  %v64_v16 = vmul.f32 0.45, %v15_v13 }
   0xe   :  { %111 = vst [vmem:[%s464_s1 + $0x28] sm:$0xff] %v62_v11  ;;  %v65_v17 = vmul.f32 0.45, %v16_v14 }
  0x15   :  { %v17_v18 = vld [vmem:[%s463_s0 + $0x48] sm:$0xff]  ;;  %v18_v19 = vld [vmem:[%s463_s0 + $0x50] sm:$0xff]  ;;  %v19_v20 = vld [vmem:[%s463_s0 + $0x58] sm:$0xff] }
  0x16   :  { %112 = vst [vmem:[%s464_s1 + $0x30] sm:$0xff] %v63_v15  ;;  %113 = vst [vmem:[%s464_s1 + $0x38] sm:$0xff] %v64_v16  ;;  %v66_v21 = vmul.f32 0.45, %v17_v18  ;;  %v67_v22 = vmul.f32 0.45, %v18_v19 }
  0x17   :  { %114 = vst [vmem:[%s464_s1 + $0x40] sm:$0xff] %v65_v17  ;;  %v68_v23 = vmul.f32 0.45, %v19_v20 }
  0x1e   :  { %v20_v24 = vld [vmem:[%s463_s0 + $0x60] sm:$0xff]  ;;  %v21_v25 = vld [vmem:[%s463_s0 + $0x68] sm:$0xff]  ;;  %v22_v26 = vld [vmem:[%s463_s0 + $0x70] sm:$0xff] }
  0x1f   :  { %115 = vst [vmem:[%s464_s1 + $0x48] sm:$0xff] %v66_v21  ;;  %116 = vst [vmem:[%s464_s1 + $0x50] sm:$0xff] %v67_v22  ;;  %v69_v27 = vmul.f32 0.45, %v20_v24  ;;  %v70_v28 = vmul.f32 0.45, %v21_v25 }
  0x20   :  { %117 = vst [vmem:[%s464_s1 + $0x58] sm:$0xff] %v68_v23  ;;  %v71_v29 = vmul.f32 0.45, %v22_v26 }
  0x27   :  { %v23_v30 = vld [vmem:[%s463_s0 + $0x78] sm:$0xff]  ;;  %v24_v31 = vld [vmem:[%s463_s0 + $0x80] sm:$0xff]  ;;  %v25_v32 = vld [vmem:[%s463_s0 + $0x88] sm:$0xff] }
  0x28   :  { %118 = vst [vmem:[%s464_s1 + $0x60] sm:$0xff] %v69_v27  ;;  %119 = vst [vmem:[%s464_s1 + $0x68] sm:$0xff] %v70_v28  ;;  %v72_v33 = vmul.f32 0.45, %v23_v30  ;;  %v73_v34 = vmul.f32 0.45, %v24_v31 }
  0x29   :  { %120 = vst [vmem:[%s464_s1 + $0x70] sm:$0xff] %v71_v29  ;;  %v74_v35 = vmul.f32 0.45, %v25_v32 }
  0x30   :  { %v26_v36 = vld [vmem:[%s463_s0 + $0x90] sm:$0xff]  ;;  %v27_v37 = vld [vmem:[%s463_s0 + $0x98] sm:$0xff]  ;;  %v28_v38 = vld [vmem:[%s463_s0 + $0xa0] sm:$0xff] }
  0x31   :  { %121 = vst [vmem:[%s464_s1 + $0x78] sm:$0xff] %v72_v33  ;;  %122 = vst [vmem:[%s464_s1 + $0x80] sm:$0xff] %v73_v34  ;;  %v75_v39 = vmul.f32 0.45, %v26_v36  ;;  %v76_v40 = vmul.f32 0.45, %v27_v37 }
  0x32   :  { %123 = vst [vmem:[%s464_s1 + $0x88] sm:$0xff] %v74_v35  ;;  %v77_v41 = vmul.f32 0.45, %v28_v38 }
  0x39   :  { %v29_v42 = vld [vmem:[%s463_s0 + $0xa8] sm:$0xff]  ;;  %v30_v43 = vld [vmem:[%s463_s0 + $0xb0] sm:$0xff]  ;;  %v31_v44 = vld [vmem:[%s463_s0 + $0xb8] sm:$0xff] }
  0x3a   :  { %124 = vst [vmem:[%s464_s1 + $0x90] sm:$0xff] %v75_v39  ;;  %125 = vst [vmem:[%s464_s1 + $0x98] sm:$0xff] %v76_v40  ;;  %v78_v45 = vmul.f32 0.45, %v29_v42  ;;  %v79_v46 = vmul.f32 0.45, %v30_v43 }
  0x3b   :  { %126 = vst [vmem:[%s464_s1 + $0xa0] sm:$0xff] %v77_v41  ;;  %v80_v47 = vmul.f32 0.45, %v31_v44 }
  0x42   :  { %v32_v48 = vld [vmem:[%s463_s0 + $0xc0] sm:$0xff]  ;;  %v33_v49 = vld [vmem:[%s463_s0 + $0xc8] sm:$0xff]  ;;  %v34_v50 = vld [vmem:[%s463_s0 + $0xd0] sm:$0xff] }
  0x43   :  { %127 = vst [vmem:[%s464_s1 + $0xa8] sm:$0xff] %v78_v45  ;;  %128 = vst [vmem:[%s464_s1 + $0xb0] sm:$0xff] %v79_v46  ;;  %v81_v51 = vmul.f32 0.45, %v32_v48  ;;  %v82_v52 = vmul.f32 0.45, %v33_v49 }
  0x44   :  { %129 = vst [vmem:[%s464_s1 + $0xb8] sm:$0xff] %v80_v47  ;;  %v83_v53 = vmul.f32 0.45, %v34_v50 }
  0x4b   :  { %v35_v54 = vld [vmem:[%s463_s0 + $0xd8] sm:$0xff]  ;;  %v36_v55 = vld [vmem:[%s463_s0 + $0xe0] sm:$0xff]  ;;  %v37_v56 = vld [vmem:[%s463_s0 + $0xe8] sm:$0xff] }
  0x4c   :  { %130 = vst [vmem:[%s464_s1 + $0xc0] sm:$0xff] %v81_v51  ;;  %131 = vst [vmem:[%s464_s1 + $0xc8] sm:$0xff] %v82_v52  ;;  %v84_v57 = vmul.f32 0.45, %v35_v54  ;;  %v85_v58 = vmul.f32 0.45, %v36_v55 }
  0x4d   :  { %132 = vst [vmem:[%s464_s1 + $0xd0] sm:$0xff] %v83_v53  ;;  %v86_v59 = vmul.f32 0.45, %v37_v56 }
  0x54   :  { %v38_v60 = vld [vmem:[%s463_s0 + $0xf0] sm:$0xff]  ;;  %v39_v61 = vld [vmem:[%s463_s0 + $0xf8] sm:$0xff]  ;;  %v40_v62 = vld [vmem:[%s463_s0 + $0x100] sm:$0xff] }
  0x55   :  { %133 = vst [vmem:[%s464_s1 + $0xd8] sm:$0xff] %v84_v57  ;;  %134 = vst [vmem:[%s464_s1 + $0xe0] sm:$0xff] %v85_v58  ;;  %v87_v63 = vmul.f32 0.45, %v38_v60  ;;  %v88_v0 = vmul.f32 0.45, %v39_v61 }
  0x56   :  { %135 = vst [vmem:[%s464_s1 + $0xe8] sm:$0xff] %v86_v59  ;;  %v89_v1 = vmul.f32 0.45, %v40_v62 }
  0x5d   :  { %v41_v2 = vld [vmem:[%s463_s0 + $0x108] sm:$0xff]  ;;  %v42_v3 = vld [vmem:[%s463_s0 + $0x110] sm:$0xff]  ;;  %v43_v4 = vld [vmem:[%s463_s0 + $0x118] sm:$0xff] }
  0x5e   :  { %136 = vst [vmem:[%s464_s1 + $0xf0] sm:$0xff] %v87_v63  ;;  %137 = vst [vmem:[%s464_s1 + $0xf8] sm:$0xff] %v88_v0  ;;  %v90_v5 = vmul.f32 0.45, %v41_v2  ;;  %v91_v6 = vmul.f32 0.45, %v42_v3 }
  0x5f   :  { %138 = vst [vmem:[%s464_s1 + $0x100] sm:$0xff] %v89_v1  ;;  %v92_v7 = vmul.f32 0.45, %v43_v4 }
  0x66   :  { %v44_v8 = vld [vmem:[%s463_s0 + $0x120] sm:$0xff]  ;;  %v45_v9 = vld [vmem:[%s463_s0 + $0x128] sm:$0xff]  ;;  %v46_v10 = vld [vmem:[%s463_s0 + $0x130] sm:$0xff] }
  0x67   :  { %139 = vst [vmem:[%s464_s1 + $0x108] sm:$0xff] %v90_v5  ;;  %140 = vst [vmem:[%s464_s1 + $0x110] sm:$0xff] %v91_v6  ;;  %v93_v11 = vmul.f32 0.45, %v44_v8  ;;  %v94_v12 = vmul.f32 0.45, %v45_v9 }
  0x68   :  { %141 = vst [vmem:[%s464_s1 + $0x118] sm:$0xff] %v92_v7  ;;  %v95_v13 = vmul.f32 0.45, %v46_v10 }
  0x6f   :  { %v47_v14 = vld [vmem:[%s463_s0 + $0x138] sm:$0xff]  ;;  %v48_v15 = vld [vmem:[%s463_s0 + $0x140] sm:$0xff]  ;;  %v49_v16 = vld [vmem:[%s463_s0 + $0x148] sm:$0xff] }
  0x70   :  { %142 = vst [vmem:[%s464_s1 + $0x120] sm:$0xff] %v93_v11  ;;  %143 = vst [vmem:[%s464_s1 + $0x128] sm:$0xff] %v94_v12  ;;  %v96_v17 = vmul.f32 0.45, %v47_v14  ;;  %v97_v18 = vmul.f32 0.45, %v48_v15 }
  0x71   :  { %144 = vst [vmem:[%s464_s1 + $0x130] sm:$0xff] %v95_v13  ;;  %v98_v19 = vmul.f32 0.45, %v49_v16 }
  0x78   :  { %v50_v20 = vld [vmem:[%s463_s0 + $0x150] sm:$0xff]  ;;  %v51_v21 = vld [vmem:[%s463_s0 + $0x158] sm:$0xff]  ;;  %v52_v22 = vld [vmem:[%s463_s0 + $0x160] sm:$0xff] }
  0x79   :  { %145 = vst [vmem:[%s464_s1 + $0x138] sm:$0xff] %v96_v17  ;;  %146 = vst [vmem:[%s464_s1 + $0x140] sm:$0xff] %v97_v18  ;;  %v99_v23 = vmul.f32 0.45, %v50_v20  ;;  %v100_v24 = vmul.f32 0.45, %v51_v21 }
  0x7a   :  { %147 = vst [vmem:[%s464_s1 + $0x148] sm:$0xff] %v98_v19  ;;  %v101_v25 = vmul.f32 0.45, %v52_v22 }
  0x81   :  { %v53_v26 = vld [vmem:[%s463_s0 + $0x168] sm:$0xff]  ;;  %v54_v27 = vld [vmem:[%s463_s0 + $0x170] sm:$0xff]  ;;  %v55_v28 = vld [vmem:[%s463_s0 + $0x178] sm:$0xff] }
  0x82   :  { %148 = vst [vmem:[%s464_s1 + $0x150] sm:$0xff] %v99_v23  ;;  %149 = vst [vmem:[%s464_s1 + $0x158] sm:$0xff] %v100_v24  ;;  %v102_v29 = vmul.f32 0.45, %v53_v26  ;;  %v103_v30 = vmul.f32 0.45, %v54_v27 }
  0x83   :  { %150 = vst [vmem:[%s464_s1 + $0x160] sm:$0xff] %v101_v25  ;;  %v104_v31 = vmul.f32 0.45, %v55_v28 }
  0x8a   :  { %v56_v32 = vld [vmem:[%s463_s0 + $0x180] sm:$0xff] }
  0x8b   :  { %151 = vst [vmem:[%s464_s1 + $0x168] sm:$0xff] %v102_v29  ;;  %152 = vst [vmem:[%s464_s1 + $0x170] sm:$0xff] %v103_v30  ;;  %v105_v33 = vmul.f32 0.45, %v56_v32 }
  0x8c   :  { %153 = vst [vmem:[%s464_s1 + $0x178] sm:$0xff] %v104_v31 }
  0x8d   :  { %154 = vst [vmem:[%s464_s1 + $0x180] sm:$0xff] %v105_v33 }

</bundles_post_ra>
